<compile_context>
chip_gen: v6e
topology: v6e:2x2x1
jax: 0.10.0
libtpu: 0.0.40
codegen_flags: <defaults>
</compile_context>

<pallas_src>
import jax
import jax.numpy as jnp
from jax import lax
from jax.experimental import pallas as pl
from jax.experimental.pallas import tpu as pltpu

HIGHEST = jax.lax.Precision.HIGHEST


# ---------------------------------------------------------------------------
# Pallas kernel: fused CSRNet main branch.
#   per grid step (batch b, pixel tile t):
#     x: (Cin, TP)
#     h = relu( W1b @ x + k1 )     # 1x1 conv with FiLM folded into W/b
#     h = relu( W2b @ h + k2 )
#     o =       W3b @ h + k3       # last layer has no ReLU
#   W_ib = diag(scale_i + 1) @ W_i,  k_i = bias_i*(scale_i+1) + shift_i  (per batch).
# ---------------------------------------------------------------------------
def _csr_main_kernel(x_ref, w1_ref, w2_ref, w3_ref,
                     k1_ref, k2_ref, k3_ref, o_ref):
    x = x_ref[0]                                                    # (Cin, TP)
    h = jnp.dot(w1_ref[0], x, preferred_element_type=jnp.float32)   # (NF, TP)
    h = jnp.maximum(h + k1_ref[0], 0.0)                             # bias + ReLU
    h = jnp.dot(w2_ref[0], h, preferred_element_type=jnp.float32)   # (NF, TP)
    h = jnp.maximum(h + k2_ref[0], 0.0)
    h = jnp.dot(w3_ref[0], h, preferred_element_type=jnp.float32)   # (Cout, TP)
    o_ref[0] = h + k3_ref[0]


def csr_main(x_cp, w1b, w2b, w3b, k1, k2, k3, *, tile_p=32768):
    """x_cp: (B, Cin, P) f32, w_ib: (B, Cout_i, Cin_i), k_i: (B, Cout_i, 1)."""
    B, Cin, P = x_cp.shape
    NF = w1b.shape[1]
    Cout = w3b.shape[1]

    if P <= tile_p:
        tp, p_pad = P, P                       # single tile == full array dim
    else:
        tp = tile_p                            # multiple of 128 (lane-aligned)
        p_pad = -(-P // tp) * tp
        if p_pad != P:
            x_cp = jnp.pad(x_cp, ((0, 0), (0, 0), (0, p_pad - P)))
    n_t = p_pad // tp

    def per_batch(shape):                      # tiny per-batch folded params,
        return pl.BlockSpec((1,) + shape, lambda b, t: (b, 0, 0))  # resident over t

    out = pl.pallas_call(
        _csr_main_kernel,
        out_shape=jax.ShapeDtypeStruct((B, Cout, p_pad), jnp.float32),
        grid=(B, n_t),
        in_specs=[
            pl.BlockSpec((1, Cin, tp), lambda b, t: (b, 0, t)),
            per_batch((NF, Cin)), per_batch((NF, NF)), per_batch((Cout, NF)),
            per_batch((NF, 1)), per_batch((NF, 1)), per_batch((Cout, 1)),
        ],
        out_specs=pl.BlockSpec((1, Cout, tp), lambda b, t: (b, 0, t)),
        compiler_params=pltpu.CompilerParams(
            dimension_semantics=("parallel", "parallel")),
    )(x_cp, w1b, w2b, w3b, k1, k2, k3)
    return out[:, :, :P]


# ---------------------------------------------------------------------------
# JAX glue: tiny condition net (left to XLA on purpose) + fused FiLM linears.
# ---------------------------------------------------------------------------
def condition_forward(x, p):
    """[ZeroPad(1) -> conv(stride 2) -> ReLU] x3 -> spatial mean."""
    def conv_relu(h, w, b, stride):
        hp = jnp.pad(h, ((0, 0), (0, 0), (1, 1), (1, 1)))          # ZeroPad2d(1)
        y = lax.conv_general_dilated(
            hp, w, (stride, stride), 'VALID',
            dimension_numbers=('NCHW', 'OIHW', 'NCHW'), precision=HIGHEST)
        return jnp.maximum(y + b.reshape(1, -1, 1, 1), 0.0)

    h = conv_relu(x, p['c1_w'], p['c1_b'], 2)
    h = conv_relu(h, p['c2_w'], p['c2_b'], 2)
    h = conv_relu(h, p['c3_w'], p['c3_b'], 2)
    return jnp.mean(h, axis=(2, 3))                                # (B, cond_nf)


def film_params(cond, p):
    """All six FiLM Linears fused into one (B, cond_nf) @ (cond_nf, tot) matmul."""
    NF = p['s1_w'].shape[0]
    out_nc = p['s3_w'].shape[0]
    w_all = jnp.concatenate([p['s1_w'], p['t1_w'], p['s2_w'], p['t2_w'],
                             p['s3_w'], p['t3_w']], axis=0).T      # (cond_nf, tot)
    b_all = jnp.concatenate([p['s1_b'], p['t1_b'], p['s2_b'], p['t2_b'],
                             p['s3_b'], p['t3_b']])
    film = jnp.dot(cond, w_all, precision=HIGHEST) + b_all         # (B, tot)
    idx = [NF, 2 * NF, 3 * NF, 4 * NF, 4 * NF + out_nc]
    s1, t1, s2, t2, s3, t3 = jnp.split(film, idx, axis=1)
    return (s1, t1), (s2, t2), (s3, t3)


def csrnet_forward(x, p, *, tile_p=32768):
    B, Cin, H, W = x.shape
    NF = p['m1_w'].shape[0]
    out_nc = p['m3_w'].shape[0]
    P = H * W

    cond = condition_forward(x, p)
    (s1, t1), (s2, t2), (s3, t3) = film_params(cond, p)

    # Fold FiLM into per-batch weights/biases:
    #   (W x + b)*(1+s) + t  ==  (diag(1+s) W) x + [b*(1+s) + t]
    def fold(s, t, w, b):
        g = s + 1.0                                                # (B, C)
        wb = g[:, :, None] * w[None, :, :]                         # (B, Cout, Cin)
        kb = (b[None, :] * g + t)[:, :, None]                      # (B, Cout, 1)
        return wb, kb

    w1b, k1 = fold(s1, t1, p['m1_w'].reshape(NF, Cin), p['m1_b'])
    w2b, k2 = fold(s2, t2, p['m2_w'].reshape(NF, NF), p['m2_b'])
    w3b, k3 = fold(s3, t3, p['m3_w'].reshape(out_nc, NF), p['m3_b'])

    out = csr_main(
        x.reshape(B, Cin, P),                                      # NCHW view, no transpose
        w1b, w2b, w3b, k1, k2, k3, tile_p=tile_p)                  # (B, out_nc, P)
    return out.reshape(B, out_nc, H, W)


# ---------------------------------------------------------------------------
# Pure-JAX reference (mirrors the PyTorch module literally) for sanity check.
# ---------------------------------------------------------------------------
def ref_forward(x, p):
    def conv(h, w, b, stride, pad):
        y = lax.conv_general_dilated(
            h, w, (stride, stride), [(pad, pad), (pad, pad)],
            dimension_numbers=('NCHW', 'OIHW', 'NCHW'), precision=HIGHEST)
        return y + b.reshape(1, -1, 1, 1)

    relu = lambda v: jnp.maximum(v, 0.0)
    zpad = lambda v: jnp.pad(v, ((0, 0), (0, 0), (1, 1), (1, 1)))
    c = relu(conv(zpad(x), p['c1_w'], p['c1_b'], 2, 0))
    c = relu(conv(zpad(c), p['c2_w'], p['c2_b'], 2, 0))
    c = relu(conv(zpad(c), p['c3_w'], p['c3_b'], 2, 0))
    cond = jnp.mean(c, axis=(2, 3))

    lin = lambda cc, w, b: jnp.dot(cc, w.T, precision=HIGHEST) + b
    scale1, shift1 = lin(cond, p['s1_w'], p['s1_b']), lin(cond, p['t1_w'], p['t1_b'])
    scale2, shift2 = lin(cond, p['s2_w'], p['s2_b']), lin(cond, p['t2_w'], p['t2_b'])
    scale3, shift3 = lin(cond, p['s3_w'], p['s3_b']), lin(cond, p['t3_w'], p['t3_b'])

    bc = lambda v: v[:, :, None, None]
    out = conv(x, p['m1_w'], p['m1_b'], 1, 0)
    out = relu(out * bc(scale1) + bc(shift1) + out)
    out = conv(out, p['m2_w'], p['m2_b'], 1, 0)
    out = relu(out * bc(scale2) + bc(shift2) + out)
    out = conv(out, p['m3_w'], p['m3_b'], 1, 0)
    out = out * bc(scale3) + bc(shift3) + out
    return out


def init_params(key, in_nc=3, out_nc=3, base_nf=16, cond_nf=8):
    shapes = {
        'c1_w': (cond_nf, in_nc, 7, 7), 'c1_b': (cond_nf,),
        'c2_w': (cond_nf, cond_nf, 3, 3), 'c2_b': (cond_nf,),
        'c3_w': (cond_nf, cond_nf, 3, 3), 'c3_b': (cond_nf,),
        's1_w': (base_nf, cond_nf), 's1_b': (base_nf,),
        's2_w': (base_nf, cond_nf), 's2_b': (base_nf,),
        's3_w': (out_nc, cond_nf), 's3_b': (out_nc,),
        't1_w': (base_nf, cond_nf), 't1_b': (base_nf,),
        't2_w': (base_nf, cond_nf), 't2_b': (base_nf,),
        't3_w': (out_nc, cond_nf), 't3_b': (out_nc,),
        'm1_w': (base_nf, in_nc, 1, 1), 'm1_b': (base_nf,),
        'm2_w': (base_nf, base_nf, 1, 1), 'm2_b': (base_nf,),
        'm3_w': (out_nc, base_nf, 1, 1), 'm3_b': (out_nc,),
    }
    params = {}
    keys = jax.random.split(key, len(shapes))
    for k_, (name, shp) in zip(keys, sorted(shapes.items())):
        scale = 0.1 if name.endswith('_w') else 0.05
        params[name] = scale * jax.random.normal(k_, shp, jnp.float32)
    return params


if __name__ == "__main__":
    key = jax.random.PRNGKey(0)
    kp, kx = jax.random.split(key)
    params = init_params(kp, in_nc=3, out_nc=3, base_nf=16, cond_nf=8)
    x = jax.random.normal(kx, (2, 3, 16, 16), jnp.float32)

    out = jax.block_until_ready(csrnet_forward(x, params))
    ref = jax.block_until_ready(ref_forward(x, params))

    assert out.shape == (2, 3, 16, 16), out.shape
    assert bool(jnp.all(jnp.isfinite(out)))
    max_err = float(jnp.max(jnp.abs(out - ref)))
    assert bool(jnp.allclose(out, ref, atol=1e-3, rtol=1e-3)), max_err
    print("KERNEL_OK")
</pallas_src>

<mosaic_0001>
module attributes {stable_mosaic.version = 11 : i64} {
  func.func @_csr_main_kernel(%arg0: i32, %arg1: i32, %arg2: memref<1x3x256xf32, #tpu.memory_space<vmem>>, %arg3: memref<1x16x3xf32, #tpu.memory_space<vmem>>, %arg4: memref<1x16x16xf32, #tpu.memory_space<vmem>>, %arg5: memref<1x3x16xf32, #tpu.memory_space<vmem>>, %arg6: memref<1x16x1xf32, #tpu.memory_space<vmem>>, %arg7: memref<1x16x1xf32, #tpu.memory_space<vmem>>, %arg8: memref<1x3x1xf32, #tpu.memory_space<vmem>>, %arg9: memref<1x3x256xf32, #tpu.memory_space<vmem>>) attributes {dimension_semantics = [#tpu.dimension_semantics<parallel>, #tpu.dimension_semantics<parallel>], iteration_bounds = array<i64: 2, 1>, scalar_prefetch = 0 : i64, scratch_operands = 0 : i64, tpu.core_type = #tpu.core_type<tc>, window_params = [{transform_indices = @transform_0, window_bounds = array<i64: 1, 3, 256>}, {transform_indices = @transform_1, window_bounds = array<i64: 1, 16, 3>}, {transform_indices = @transform_2, window_bounds = array<i64: 1, 16, 16>}, {transform_indices = @transform_3, window_bounds = array<i64: 1, 3, 16>}, {transform_indices = @transform_4, window_bounds = array<i64: 1, 16, 1>}, {transform_indices = @transform_5, window_bounds = array<i64: 1, 16, 1>}, {transform_indices = @transform_6, window_bounds = array<i64: 1, 3, 1>}, {transform_indices = @transform_7, window_bounds = array<i64: 1, 3, 256>}]} {
    %c0 = arith.constant 0 : index
    %c0_0 = arith.constant 0 : index
    %c0_1 = arith.constant 0 : index
    %0 = vector.load %arg2[%c0, %c0_0, %c0_1] : memref<1x3x256xf32, #tpu.memory_space<vmem>>, vector<1x3x256xf32>
    %1 = vector.shape_cast %0 : vector<1x3x256xf32> to vector<3x256xf32>
    %c0_2 = arith.constant 0 : index
    %c0_3 = arith.constant 0 : index
    %c0_4 = arith.constant 0 : index
    %2 = vector.load %arg3[%c0_2, %c0_3, %c0_4] : memref<1x16x3xf32, #tpu.memory_space<vmem>>, vector<1x16x3xf32>
    %3 = vector.shape_cast %2 : vector<1x16x3xf32> to vector<16x3xf32>
    %cst = arith.constant dense<0.000000e+00> : vector<16x256xf32>
    %4 = tpu.matmul %3, %1, %cst {dimension_numbers = #tpu.dot_dimension_numbers<[1], [0], [0], [1], [0, 0, 1, 1], [], []>} : vector<16x3xf32>, vector<3x256xf32>, vector<16x256xf32> -> vector<16x256xf32>
    %c0_5 = arith.constant 0 : index
    %c0_6 = arith.constant 0 : index
    %c0_7 = arith.constant 0 : index
    %5 = vector.load %arg6[%c0_5, %c0_6, %c0_7] : memref<1x16x1xf32, #tpu.memory_space<vmem>>, vector<1x16x1xf32>
    %6 = vector.shape_cast %5 : vector<1x16x1xf32> to vector<16x1xf32>
    %7 = vector.broadcast %6 : vector<16x1xf32> to vector<16x256xf32>
    %8 = arith.addf %4, %7 : vector<16x256xf32>
    %cst_8 = arith.constant 0.000000e+00 : f32
    %9 = vector.broadcast %cst_8 : f32 to vector<16x256xf32>
    %10 = arith.maximumf %8, %9 : vector<16x256xf32>
    %c0_9 = arith.constant 0 : index
    %c0_10 = arith.constant 0 : index
    %c0_11 = arith.constant 0 : index
    %11 = vector.load %arg4[%c0_9, %c0_10, %c0_11] : memref<1x16x16xf32, #tpu.memory_space<vmem>>, vector<1x16x16xf32>
    %12 = vector.shape_cast %11 : vector<1x16x16xf32> to vector<16x16xf32>
    %cst_12 = arith.constant dense<0.000000e+00> : vector<16x256xf32>
    %13 = tpu.matmul %12, %10, %cst_12 {dimension_numbers = #tpu.dot_dimension_numbers<[1], [0], [0], [1], [0, 0, 1, 1], [], []>} : vector<16x16xf32>, vector<16x256xf32>, vector<16x256xf32> -> vector<16x256xf32>
    %c0_13 = arith.constant 0 : index
    %c0_14 = arith.constant 0 : index
    %c0_15 = arith.constant 0 : index
    %14 = vector.load %arg7[%c0_13, %c0_14, %c0_15] : memref<1x16x1xf32, #tpu.memory_space<vmem>>, vector<1x16x1xf32>
    %15 = vector.shape_cast %14 : vector<1x16x1xf32> to vector<16x1xf32>
    %16 = vector.broadcast %15 : vector<16x1xf32> to vector<16x256xf32>
    %17 = arith.addf %13, %16 : vector<16x256xf32>
    %cst_16 = arith.constant 0.000000e+00 : f32
    %18 = vector.broadcast %cst_16 : f32 to vector<16x256xf32>
    %19 = arith.maximumf %17, %18 : vector<16x256xf32>
    %c0_17 = arith.constant 0 : index
    %c0_18 = arith.constant 0 : index
    %c0_19 = arith.constant 0 : index
    %20 = vector.load %arg5[%c0_17, %c0_18, %c0_19] : memref<1x3x16xf32, #tpu.memory_space<vmem>>, vector<1x3x16xf32>
    %21 = vector.shape_cast %20 : vector<1x3x16xf32> to vector<3x16xf32>
    %cst_20 = arith.constant dense<0.000000e+00> : vector<3x256xf32>
    %22 = tpu.matmul %21, %19, %cst_20 {dimension_numbers = #tpu.dot_dimension_numbers<[1], [0], [0], [1], [0, 0, 1, 1], [], []>} : vector<3x16xf32>, vector<16x256xf32>, vector<3x256xf32> -> vector<3x256xf32>
    %c0_21 = arith.constant 0 : index
    %c0_22 = arith.constant 0 : index
    %c0_23 = arith.constant 0 : index
    %23 = vector.load %arg8[%c0_21, %c0_22, %c0_23] : memref<1x3x1xf32, #tpu.memory_space<vmem>>, vector<1x3x1xf32>
    %24 = vector.shape_cast %23 : vector<1x3x1xf32> to vector<3x1xf32>
    %25 = vector.broadcast %24 : vector<3x1xf32> to vector<3x256xf32>
    %26 = arith.addf %22, %25 : vector<3x256xf32>
    %c0_24 = arith.constant 0 : index
    %c0_25 = arith.constant 0 : index
    %c0_26 = arith.constant 0 : index
    %27 = vector.load %arg9[%c0_24, %c0_25, %c0_26] : memref<1x3x256xf32, #tpu.memory_space<vmem>>, vector<1x3x256xf32>
    %28 = vector.shape_cast %27 : vector<1x3x256xf32> to vector<3x256xf32>
    %29 = vector.shape_cast %26 : vector<3x256xf32> to vector<1x3x256xf32>
    tpu.vector_store %arg9[%c0_24, %c0_25, %c0_26], %29 {strides = array<i32>} : memref<1x3x256xf32, #tpu.memory_space<vmem>>, vector<1x3x256xf32>,
    return
  }
  func.func @transform_0(%arg0: i32, %arg1: i32) -> (i32, i32, i32) {
    %c0_i32 = arith.constant 0 : i32
    %c0_i32_0 = arith.constant 0 : i32
    return %arg0, %c0_i32, %arg1 : i32, i32, i32
  }
  func.func @transform_1(%arg0: i32, %arg1: i32) -> (i32, i32, i32) {
    %c0_i32 = arith.constant 0 : i32
    %c0_i32_0 = arith.constant 0 : i32
    %c0_i32_1 = arith.constant 0 : i32
    return %arg0, %c0_i32, %c0_i32_0 : i32, i32, i32
  }
  func.func @transform_2(%arg0: i32, %arg1: i32) -> (i32, i32, i32) {
    %c0_i32 = arith.constant 0 : i32
    %c0_i32_0 = arith.constant 0 : i32
    %c0_i32_1 = arith.constant 0 : i32
    return %arg0, %c0_i32, %c0_i32_0 : i32, i32, i32
  }
  func.func @transform_3(%arg0: i32, %arg1: i32) -> (i32, i32, i32) {
    %c0_i32 = arith.constant 0 : i32
    %c0_i32_0 = arith.constant 0 : i32
    %c0_i32_1 = arith.constant 0 : i32
    return %arg0, %c0_i32, %c0_i32_0 : i32, i32, i32
  }
  func.func @transform_4(%arg0: i32, %arg1: i32) -> (i32, i32, i32) {
    %c0_i32 = arith.constant 0 : i32
    %c0_i32_0 = arith.constant 0 : i32
    %c0_i32_1 = arith.constant 0 : i32
    return %arg0, %c0_i32, %c0_i32_0 : i32, i32, i32
  }
  func.func @transform_5(%arg0: i32, %arg1: i32) -> (i32, i32, i32) {
    %c0_i32 = arith.constant 0 : i32
    %c0_i32_0 = arith.constant 0 : i32
    %c0_i32_1 = arith.constant 0 : i32
    return %arg0, %c0_i32, %c0_i32_0 : i32, i32, i32
  }
  func.func @transform_6(%arg0: i32, %arg1: i32) -> (i32, i32, i32) {
    %c0_i32 = arith.constant 0 : i32
    %c0_i32_0 = arith.constant 0 : i32
    %c0_i32_1 = arith.constant 0 : i32
    return %arg0, %c0_i32, %c0_i32_0 : i32, i32, i32
  }
  func.func @transform_7(%arg0: i32, %arg1: i32) -> (i32, i32, i32) {
    %c0_i32 = arith.constant 0 : i32
    %c0_i32_0 = arith.constant 0 : i32
    return %arg0, %c0_i32, %arg1 : i32, i32, i32
  }
}

</mosaic_0001>

<bundles_post_ra>
// kernel: tpu_custom_call.1
= control target key start
LH: loop header
LB: loop body
LE: loop exit
PB: predicated region body
PF: predicated region fallthrough
CT: control target
= control target key end

     0   :  { %s1018_s24 = smov 0   ;;  %s1020_s25 = smov 0   ;;  %s1091_s0 = inlined_call_operand.vmem [shape: f32[2,3,256], index: 0, kind: input, shape index: {}]   ;;  %s1092_s1 = inlined_call_operand.vmem [shape: f32[2,16,3], index: 1, kind: input, shape index: {}]   ;;  %s1093_s2 = inlined_call_operand.vmem [shape: f32[2,16,16], index: 2, kind: input, shape index: {}]   ;;  %s1094_s3 = inlined_call_operand.vmem [shape: f32[2,3,16], index: 3, kind: input, shape index: {}]   ;;  %s1095_s4 = inlined_call_operand.vmem [shape: f32[2,16,1], index: 4, kind: input, shape index: {}]   ;;  %s1096_s5 = inlined_call_operand.vmem [shape: f32[2,16,1], index: 5, kind: input, shape index: {}]   ;;  %s1097_s6 = inlined_call_operand.vmem [shape: f32[2,3,1], index: 6, kind: input, shape index: {}]   ;;  %s1098_s7 = inlined_call_operand.vmem [shape: f32[2,3,256], index: 7, kind: output, shape index: {}]  }
   0x1   :  { %s1022_s26 = smov 0  }
   0x2 LB: > { %s29_s27 = sadd.s32 1, %s970_s25  ;;  %p893_p0 = scmp.ge.s32.totalorder %s974_s26, 1  ;;  %s974_s26 = sphi %s1022_s26, %s17_s26   ;;  %s970_s25 = sphi %s1020_s25, %s1100_s25   ;;  %s966_s24 = sphi %s1018_s24, %s1099_s24  }
   0x3   : > { %p31_p1 = scmp.ge.s32.totalorder %s29_s27, 2  ;;  %p316_p2 = scmp.lt.s32.totalorder %s974_s26, 3 }
   0x5   : > { %s1102_s27 = smov (%p31_p1, %s29_s27), 0  ;;  %p317_p3 = pnand %p893_p0, %p316_p2 }
   0x6   : > { %p385_p4 = scmp.lt.s32.totalorder (!%p317_p3), %s966_s24, 1 }
   0x7   : > { %320 = sbr.rel (%p317_p3) target bundleno = 634 (0x27a), region = 48 }
   0xc   : > { %v976_v0 = vmov 0.0   ;;  %v977_v1 = vmov 0   ;;  %s1104_s24 = smov (!%p385_p4, %s966_s24), 1  ;;  %vm456_vm0 = vcmask 1042432   ;;  %vm449_vm1 = vcmask 23552  }
   0xd   : > { %525 = vmatprep.mubr.f32.mxu0 %v976_v0  ;;  %949 = vset.pattern.permute.xlu0 %v977_v1  ;;  %s917_s28 = sshll.u32 %s1104_s24, 3  ;;  %s1040_s29 = sshll.u32 %s1104_s24, 4  ;;  %vm556_vm2 = vcmask 130048  }
   0xe   : > { %627 = vmatprep.mubr.f32.mxu1 %v976_v0  ;;  %950 = vset.pattern.permute.xlu1 %v977_v1  ;;  %s392_s9 = scalar_lea.vmem %s1091_s0, %s917_s28  ;;  %s398_s12 = scalar_lea.vmem %s1092_s1, %s1040_s29 }
   0xf   : > { %v432_v2 = vld [vmem:[%s392_s9] sm:$0x77]  ;;  %s412_s15 = scalar_lea.vmem %s1095_s4, %s1040_s29  ;;  %s900_s16 = sshll.u32 %s1104_s24, 2  ;;  %v434_v7 = vld [vmem:[%s398_s12 + $0x8] sm:$0xff] }
  0x10   : > { %v448_v3 = vcombine.high %v432_v2, %v432_v2  ;;  %v436_v4 = vld [vmem:[%s412_s15 + $0x8] sm:$0xff]  ;;  %v433_v5 = vld [vmem:[%s398_s12] sm:$0xff]  ;;  %s421_s19 = scalar_lea.vmem %s1097_s6, %s900_s16  ;;  %s417_s22 = scalar_lea.vmem %s1096_s5, %s1040_s29 }
  0x11   : > { %444 = vperm.xlu0 %949, %v436_v4   ;;  %v435_v6 = vld [vmem:[%s412_s15] sm:$0xff]  ;;  %v545_v9 = vld [vmem:[%s417_s22 + $0x8] sm:$0xff]  ;;  %s403_s8 = scalar_lea.vmem %s1093_s2, %s1040_s29  ;;  %s407_s10 = scalar_lea.vmem %s1094_s3, %s900_s16 }
  0x12   : > { %908 = vmatprep.subr.msk.mxu0 %vm456_vm0, %v448_v3  ;;  %v645_v8 = vld [vmem:[%s421_s19] sm:$0x7]  ;;  %553 = vperm.xlu1 %950, %v545_v9   ;;  %v543_v26 = vld [vmem:[%s403_s8 + $0x8] sm:$0xff]  ;;  %s430_s13 = scalar_lea.vmem %s1098_s7, %s917_s28 }
  0x13   : > { %909 = vmatpush1.msk.msra.mxu0 %vm456_vm0, %v432_v2  ;;  %v544_v10 = vld [vmem:[%s417_s22] sm:$0xff] }
  0x14   : > { %910 = vmatmul.mubr.msk.f32.vlgmr.msra.gmra.mxu0 %vm449_vm1, %v433_v5  ;;  %v542_v25 = vld [vmem:[%s403_s8] sm:$0xff] }
  0x15   : > { %531 = vmatprep.mubr.f32.mxu0 %v976_v0  ;;  %439 = vperm.xlu0 %949, %v435_v6   ;;  %v644_v40 = vld [vmem:[%s407_s10] sm:$0x7] }
  0x16   : > { %548 = vperm.xlu1 %950, %v544_v10  }
  0x18   : > { %911 = vmatmul.mubr.msk.f32.gmra.mxu0 %vm449_vm1, %v434_v7 }
  0x19   : > { %648 = vperm.xlu0 %949, %v645_v8   ;;  %718 = vmatprep.mubr.f32.mxu0 %v976_v0 }
  0x8c   : > { %v445_v11 = vpop.permute.xlu0 %444 }
  0x8d   : > { %v554_v27 = vpop.permute.xlu1 %553 }
  0x90   : > { %v440_v15 = vpop.permute.xlu0 %439 }
  0x91   : > { %v549_v31 = vpop.permute.xlu1 %548 }
  0x94   : > { %v649_v43 = vpop.permute.xlu0 %648 }
  0xd4   : > { %v527_v12 = vpop.f32.mrf.mxu0 }
  0xd5   : > { %v528_v20 = vadd.f32 %v527_v12, %v440_v15 }
  0xd6   : > { %v529_v13 = vpop.f32.mrf.mxu0 }
  0xd7   : > { %v530_v18 = vadd.f32 %v529_v13, %v440_v15  ;;  %v538_v24 = vmax.f32 %v528_v20, 0.0 }
  0xd8   : > { %v533_v14 = vpop.f32.mrf.mxu0 }
  0xd9   : > { %v534_v16 = vadd.f32 %v533_v14, %v445_v11  ;;  %v539_v23 = vmax.f32 %v530_v18, 0.0 }
  0xda   : > { %v535_v17 = vpop.f32.mrf.mxu0 }
  0xdb   : > { %v536_v19 = vadd.f32 %v535_v17, %v445_v11  ;;  %v540_v22 = vmax.f32 %v534_v16, 0.0 }
  0xdd   : > { %v541_v21 = vmax.f32 %v536_v19, 0.0 }
  0xdf   : > { %591 = vmatprep.subr.mxu1 %v541_v21 }
  0xe0   : > { %592 = vmatpush1.msra.mxu1 %v540_v22 }
  0xe1   : > { %593 = vmatprep.subr.mxu1 %v539_v23 }
  0xe2   : > { %594 = vmatpush1.msra.mxu1 %v538_v24 }
  0xe3   : > { %912 = vmatmul.mubr.msk.f32.vlgmr.msra.gmra.mxu1 %vm556_vm2, %v542_v25 }
  0xe4   : > { %633 = vmatprep.mubr.f32.mxu1 %v976_v0 }
  0xe7   : > { %913 = vmatmul.mubr.msk.f32.gmra.mxu1 %vm556_vm2, %v543_v26 }
 0x1a3   : > { %v629_v28 = vpop.f32.mrf.mxu1 }
 0x1a4   : > { %v630_v36 = vadd.f32 %v629_v28, %v549_v31 }
 0x1a5   : > { %v631_v29 = vpop.f32.mrf.mxu1 }
 0x1a6   : > { %v632_v34 = vadd.f32 %v631_v29, %v549_v31  ;;  %v640_v41 = vmax.f32 %v630_v36, 0.0 }
 0x1a7   : > { %v635_v30 = vpop.f32.mrf.mxu1 }
 0x1a8   : > { %v636_v32 = vadd.f32 %v635_v30, %v554_v27  ;;  %v641_v39 = vmax.f32 %v632_v34, 0.0 }
 0x1a9   : > { %v637_v33 = vpop.f32.mrf.mxu1 }
 0x1aa   : > { %v638_v35 = vadd.f32 %v637_v33, %v554_v27  ;;  %v642_v38 = vmax.f32 %v636_v32, 0.0 }
 0x1ac   : > { %v643_v37 = vmax.f32 %v638_v35, 0.0 }
 0x1ae   : > { %682 = vmatprep.subr.mxu0 %v643_v37 }
 0x1af   : > { %683 = vmatpush1.msra.mxu0 %v642_v38 }
 0x1b0   : > { %684 = vmatprep.subr.mxu0 %v641_v39 }
 0x1b1   : > { %685 = vmatpush1.msra.mxu0 %v640_v41 }
 0x1b2   : > { %914 = vmatmul.mubr.msk.f32.vlgmr.msra.gmra.mxu0 %vm556_vm2, %v644_v40 }
 0x272   : > { %v720_v42 = vpop.f32.mrf.mxu0 }
 0x273   : > { %v721_v45 = vadd.f32 %v720_v42, %v649_v43 }
 0x274   : > { %v722_v44 = vpop.f32.mrf.mxu0 }
 0x275   : > { %v723_v46 = vadd.f32 %v722_v44, %v649_v43 }
 0x277   : > { %v727_v47 = vcombine.low %v721_v45, %v723_v46 }
 0x279   : > { %729 = vst [vmem:[%s430_s13] sm:$0x77] %v727_v47 }
 0x27a PF: > { %s17_s26 = sadd.s32 1, %s974_s26   ;;  %s1099_s24 = smov %s970_s25 }
 0x27b   : > { %p14_p5 = scmp.ge.s32.totalorder %s17_s26, 4   ;;  %s1100_s25 = smov %s1102_s27 }
 0x27d   :  { %16 = sbr.rel (!%p14_p5) target bundleno = 2 (0x2), region = 96 }

</bundles_post_ra>
